<compile_context>
chip_gen: v7x
topology: tpu7x:2x2x1
jax: 0.10.0
libtpu: 0.0.40
codegen_flags: <defaults>
</compile_context>

<pallas_src>
import math

import jax
import jax.numpy as jnp
from jax import lax
from jax.experimental import pallas as pl

# Align kernel and reference numerics: full-precision f32 matmuls everywhere.
jax.config.update("jax_default_matmul_precision", "highest")

# constants (synthetic stand-ins for the original `constants` module)
BLOCK_SIZE = 8      # max sequence length T
N_EMBED = 32        # n_embed
HEAD_SIZE = 16      # head_size
DROPOUT = 0.1       # unused at inference


def head_kernel(x_ref, wqkv_ref, o_ref):
    """One self-attention head, all batch rows in a single invocation.

    Block shapes (full arrays, single grid point):
      x_ref    : (B, T, C)
      wqkv_ref : (C, 3H)   packed [Wq | Wk | Wv]
      o_ref    : (B, T, H)
    """
    B, T, C = x_ref.shape
    H = o_ref.shape[-1]

    # Collapse batch into the matmul M-dimension: (B,T,C) -> (B*T,C) is a
    # sublane-only reshape (last dim unchanged), effectively free.
    x2d = x_ref[...].reshape(B * T, C)
    wqkv = wqkv_ref[...]

    # Fused QKV projection: one MXU push for all of q, k, v.
    qkv = jnp.dot(x2d, wqkv, preferred_element_type=jnp.float32)   # (B*T, 3H)

    # NOTE: the reference module MULTIPLIES by sqrt(head_size) (k.shape[-1]**0.5),
    # it does not divide — reproduced exactly to preserve forward semantics.
    # The scale is folded into q (a (B*T, H) tile) instead of the (B,T,T) scores.
    scale = jnp.float32(math.sqrt(H))
    q = (qkv[:, 0:H] * scale).reshape(B, T, H)
    k = qkv[:, H:2 * H].reshape(B, T, H)
    v = qkv[:, 2 * H:3 * H].reshape(B, T, H)

    # Batched q @ kᵀ without an explicit transpose: contract last axes, batch over B.
    wei = lax.dot_general(
        q, k,
        dimension_numbers=(((2,), (2,)), ((0,), (0,))),
        preferred_element_type=jnp.float32)                        # (B, T, T)

    # Causal (tril) mask. At real T this should be gated per q/kv block with
    # pl.when; at T=8 the two iotas + compare are negligible.
    row = lax.broadcasted_iota(jnp.int32, (T, T), 0)
    col = lax.broadcasted_iota(jnp.int32, (T, T), 1)
    wei = jnp.where((row >= col)[None, :, :], wei, -jnp.inf)

    # Numerically stable softmax along the last axis. Exact divide: causal
    # masking guarantees at least one unmasked entry per row, so denom >= 1.
    m = jnp.max(wei, axis=-1, keepdims=True)
    e = jnp.exp(wei - m)
    attn = e / jnp.sum(e, axis=-1, keepdims=True)

    # TODO(synk): nn.Dropout is identity in eval mode; training-mode dropout
    # (pltpu.prng_random_bits-based masking) is not implemented here.

    out = lax.dot_general(
        attn, v,
        dimension_numbers=(((2,), (1,)), ((0,), (0,))),
        preferred_element_type=jnp.float32)                        # (B, T, H)
    o_ref[...] = out.astype(o_ref.dtype)


def fuse_qkv_weights(wq, wk, wv):
    """Fuse the three (C, H) projections into one (C, 3H) operand.

    Hoisted out of the per-call path (review item): do this once at init so the
    concat is not a per-forward HBM read/rewrite of the full weight.
    """
    return jnp.concatenate([wq, wk, wv], axis=1)                    # (C, 3H)


@jax.jit
def head_forward(x, wqkv):
    """x: (B, T, C); wqkv: (C, 3H) pre-fused [Wq|Wk|Wv]; returns (B, T, H)."""
    B, T, C = x.shape
    H = wqkv.shape[1] // 3
    return pl.pallas_call(
        head_kernel,
        out_shape=jax.ShapeDtypeStruct((B, T, H), x.dtype),
        # Single grid point: whole problem (~a few KB) in one invocation,
        # no per-batch grid-step overhead, weights DMA'd once.
        in_specs=[
            pl.BlockSpec((B, T, C), lambda: (0, 0, 0)),
            pl.BlockSpec((C, 3 * H), lambda: (0, 0)),
        ],
        out_specs=pl.BlockSpec((B, T, H), lambda: (0, 0, 0)),
    )(x, wqkv)


def reference_forward(x, wk, wq, wv):
    """Pure-JAX reference mirroring the PyTorch module."""
    k = x @ wk
    q = x @ wq
    v = x @ wv
    wei = q @ jnp.swapaxes(k, -2, -1) * (k.shape[-1] ** 0.5)
    T = x.shape[1]
    tril = jnp.tril(jnp.ones((T, T)))
    wei = jnp.where(tril == 0, -jnp.inf, wei)
    wei = jax.nn.softmax(wei, axis=-1)
    return wei @ v


if __name__ == "__main__":
    key = jax.random.PRNGKey(0)
    kx, kk, kq, kv = jax.random.split(key, 4)

    B, T, C, H = 2, BLOCK_SIZE, N_EMBED, HEAD_SIZE

    x = jax.random.normal(kx, (B, T, C), dtype=jnp.float32)
    # deterministic init matching nn.Linear's uniform(-1/sqrt(fan_in), 1/sqrt(fan_in))
    bound = 1.0 / math.sqrt(C)
    wk = jax.random.uniform(kk, (C, H), jnp.float32, -bound, bound)
    wq = jax.random.uniform(kq, (C, H), jnp.float32, -bound, bound)
    wv = jax.random.uniform(kv, (C, H), jnp.float32, -bound, bound)

    # Weight fusion happens once, at "init" time, not per forward call.
    wqkv = fuse_qkv_weights(wq, wk, wv)

    out = head_forward(x, wqkv)
    out = jax.block_until_ready(out)

    ref = reference_forward(x, wk, wq, wv)
    assert out.shape == (B, T, H)
    assert jnp.allclose(out, ref, atol=1e-3, rtol=1e-3), "mismatch vs reference"

    print("KERNEL_OK")
</pallas_src>

<mosaic_0001>
module attributes {stable_mosaic.version = 11 : i64} {
  func.func @head_kernel(%arg0: memref<2x8x32xf32, #tpu.memory_space<vmem>>, %arg1: memref<32x48xf32, #tpu.memory_space<vmem>>, %arg2: memref<2x8x16xf32, #tpu.memory_space<vmem>>) attributes {dimension_semantics = [], scalar_prefetch = 0 : i64, scratch_operands = 0 : i64, tpu.core_type = #tpu.core_type<tc>} {
    %c0 = arith.constant 0 : index
    %c0_0 = arith.constant 0 : index
    %c0_1 = arith.constant 0 : index
    %0 = vector.load %arg0[%c0, %c0_0, %c0_1] : memref<2x8x32xf32, #tpu.memory_space<vmem>>, vector<2x8x32xf32>
    %1 = vector.shape_cast %0 : vector<2x8x32xf32> to vector<16x32xf32>
    %c0_2 = arith.constant 0 : index
    %c0_3 = arith.constant 0 : index
    %2 = vector.load %arg1[%c0_2, %c0_3] : memref<32x48xf32, #tpu.memory_space<vmem>>, vector<32x48xf32>
    %cst = arith.constant dense<0.000000e+00> : vector<16x48xf32>
    %3 = tpu.matmul %1, %2, %cst {dimension_numbers = #tpu.dot_dimension_numbers<[1], [0], [0], [1], [0, 0, 1, 1], [], []>, precision = #tpu.contract_precision<fp32>} : vector<16x32xf32>, vector<32x48xf32>, vector<16x48xf32> -> vector<16x48xf32>
    %4 = vector.extract_strided_slice %3 {offsets = [0, 0], sizes = [16, 16], strides = [1, 1]} : vector<16x48xf32> to vector<16x16xf32>
    %cst_4 = arith.constant 4.000000e+00 : f32
    %5 = vector.broadcast %cst_4 : f32 to vector<16x16xf32>
    %6 = arith.mulf %4, %5 : vector<16x16xf32>
    %7 = vector.shape_cast %6 : vector<16x16xf32> to vector<2x8x16xf32>
    %8 = vector.extract_strided_slice %3 {offsets = [0, 16], sizes = [16, 16], strides = [1, 1]} : vector<16x48xf32> to vector<16x16xf32>
    %9 = vector.shape_cast %8 : vector<16x16xf32> to vector<2x8x16xf32>
    %10 = vector.extract_strided_slice %3 {offsets = [0, 32], sizes = [16, 16], strides = [1, 1]} : vector<16x48xf32> to vector<16x16xf32>
    %11 = vector.shape_cast %10 : vector<16x16xf32> to vector<2x8x16xf32>
    %cst_5 = arith.constant dense<0.000000e+00> : vector<2x8x8xf32>
    %12 = tpu.matmul %7, %9, %cst_5 {dimension_numbers = #tpu.dot_dimension_numbers<[2], [2], [1], [1], [0, 0, 0, 1, 1, 1], [0], [0]>, precision = #tpu.contract_precision<fp32>} : vector<2x8x16xf32>, vector<2x8x16xf32>, vector<2x8x8xf32> -> vector<2x8x8xf32>
    %13 = tpu.iota {dimensions = array<i32: 0>} : vector<8x8xi32>
    %14 = tpu.iota {dimensions = array<i32: 1>} : vector<8x8xi32>
    %15 = arith.cmpi sge, %13, %14 : vector<8x8xi32>
    %16 = vector.shape_cast %15 : vector<8x8xi1> to vector<1x8x8xi1>
    %cst_6 = arith.constant 0xFF800000 : f32
    %17 = vector.shape_cast %16 : vector<1x8x8xi1> to vector<1x8x8xi1>
    %18 = vector.broadcast %17 : vector<1x8x8xi1> to vector<2x8x8xi1>
    %19 = vector.broadcast %cst_6 : f32 to vector<2x8x8xf32>
    %20 = arith.select %18, %12, %19 : vector<2x8x8xi1>, vector<2x8x8xf32>
    %cst_7 = arith.constant dense<0xFF800000> : vector<2x8xf32>
    %21 = vector.multi_reduction <maximumf>, %20, %cst_7 [2] : vector<2x8x8xf32> to vector<2x8xf32>
    %22 = vector.shape_cast %21 : vector<2x8xf32> to vector<2x8x1xf32>
    %23 = vector.broadcast %22 : vector<2x8x1xf32> to vector<2x8x8xf32>
    %24 = arith.subf %20, %23 : vector<2x8x8xf32>
    %25 = math.exp %24 : vector<2x8x8xf32>
    %cst_8 = arith.constant dense<0.000000e+00> : vector<2x8xf32>
    %26 = vector.multi_reduction <add>, %25, %cst_8 [2] : vector<2x8x8xf32> to vector<2x8xf32>
    %27 = vector.shape_cast %26 : vector<2x8xf32> to vector<2x8x1xf32>
    %28 = vector.broadcast %27 : vector<2x8x1xf32> to vector<2x8x8xf32>
    %29 = arith.divf %25, %28 : vector<2x8x8xf32>
    %cst_9 = arith.constant dense<0.000000e+00> : vector<2x8x16xf32>
    %30 = tpu.matmul %29, %11, %cst_9 {dimension_numbers = #tpu.dot_dimension_numbers<[2], [1], [1], [2], [0, 0, 0, 1, 1, 2], [0], [0]>, precision = #tpu.contract_precision<fp32>} : vector<2x8x8xf32>, vector<2x8x16xf32>, vector<2x8x16xf32> -> vector<2x8x16xf32>
    %c0_10 = arith.constant 0 : index
    %c0_11 = arith.constant 0 : index
    %c0_12 = arith.constant 0 : index
    %31 = vector.load %arg2[%c0_10, %c0_11, %c0_12] : memref<2x8x16xf32, #tpu.memory_space<vmem>>, vector<2x8x16xf32>
    tpu.vector_store %arg2[%c0_10, %c0_11, %c0_12], %30 {strides = array<i32>} : memref<2x8x16xf32, #tpu.memory_space<vmem>>, vector<2x8x16xf32>,
    return
  }
}

</mosaic_0001>

<bundles_post_ra>
// kernel: head_forward.1
= control target key start
LH: loop header
LB: loop body
LE: loop exit
PB: predicated region body
PF: predicated region fallthrough
CT: control target
= control target key end

     0   :  { %7 = vsyncpa [#allocation3], 0  ;;  %s3096_s0 = inlined_call_operand.hbm [shape: f32[2,8,32], index: 0, kind: input, shape index: {}]   ;;  %s3097_s1 = inlined_call_operand.hbm [shape: f32[32,48], index: 1, kind: input, shape index: {}]   ;;  %s3098_s2 = inlined_call_operand.hbm [shape: f32[2,8,16], index: 2, kind: output, shape index: {}]  }
   0x1   :  { %8 = vsyncpa [#allocation6], 0 }
   0x2   :  { %9 = vsyncpa [#allocation4], 0  ;;  %s2905_s9 = smov [#allocation2]   ;;  %s2833_s13 = scalar_lea.hbm %s3096_s0, 256 }
   0x3   :  { %s15_s10 = sshll.u32 %s2905_s9, 4  ;;  %p2834_p0 = scmp.ne.s32.totalorder %s3096_s0, %s2833_s13  ;;  %s16_s10 = int_to_ptr.vmem [resolvable:$true] %s15_s10 }
   0x4   :  { %p2837_p1 = scmp.lt.u32.totalorder %s2833_s13, %s3096_s0 }
   0x6   :  { %p2839_p2 = pnand %p2837_p1, %p2834_p0 }
   0x8   :  { %2842 = shalt.err (!%p2839_p2)
}
   0x9   :  { %s2843_s18 = scalar_lea.vmem %s16_s10, 256  ;;  %p2848_p4 = scmp.lt.s32.totalorder %s16_s10, %s16_s10 }
   0xa   :  { %p2844_p3 = scmp.ne.s32.totalorder %s16_s10, %s2843_s18  ;;  %p2849_p5 = scmp.lt.s32.totalorder %s2843_s18, %s2843_s18 }
   0xc   :  { %p2850_p6 = por %p2849_p5, %p2848_p4 }
   0xe   :  { %p2851_p7 = pnand %p2850_p6, %p2844_p3 }
  0x10   :  { %2854 = shalt.err (!%p2851_p7)
}
  0x11   :  { %s2906_s19 = smov 128   ;;  %s2907_s20 = smov 8  }
  0x12   :  { %21 = dma.hbm_to_vmem [thread:$0]  %s3096_s0, 256, %s16_s10, [#allocation3], %s2906_s19, %s2906_s19, %s2907_s20  }
  0x13   :  { %s2908_s23 = smov [#allocation5]   ;;  %s2855_s27 = scalar_lea.hbm %s3097_s1, 512 }
  0x14   :  { %s27_s24 = sshll.u32 %s2908_s23, 4  ;;  %p2856_p8 = scmp.ne.s32.totalorder %s3097_s1, %s2855_s27  ;;  %s28_s24 = int_to_ptr.vmem [resolvable:$true] %s27_s24 }
  0x15   :  { %p2859_p9 = scmp.lt.u32.totalorder %s2855_s27, %s3097_s1 }
  0x17   :  { %p2861_p10 = pnand %p2859_p9, %p2856_p8 }
  0x19   :  { %2864 = shalt.err (!%p2861_p10)
}
  0x1a   :  { %s2865_s4 = scalar_lea.vmem %s28_s24, 512  ;;  %p2870_p12 = scmp.lt.s32.totalorder %s28_s24, %s28_s24 }
  0x1b   :  { %p2866_p11 = scmp.ne.s32.totalorder %s28_s24, %s2865_s4  ;;  %p2871_p13 = scmp.lt.s32.totalorder %s2865_s4, %s2865_s4 }
  0x1d   :  { %p2872_p0 = por %p2871_p13, %p2870_p12 }
  0x1f   :  { %p2873_p1 = pnand %p2872_p0, %p2866_p11 }
  0x21   :  { %2876 = shalt.err (!%p2873_p1)
}
  0x22   :  { %33 = dma.hbm_to_vmem [thread:$0]  %s3097_s1, 512, %s28_s24, [#allocation6], %s2906_s19, %s2906_s19, %s2907_s20  }
  0x23   :  { %2899 = dma.done.wait [#allocation3], 256  }
  0x24   :  { %2900 = vsyncadd [#allocation3], 4294967040 }
  0x25   :  { %2901 = dma.done.wait [#allocation6], 512  }
  0x26   :  { %2902 = vsyncadd [#allocation6], 4294966784  ;;  %vm46_vm0 = vcmask 261120   ;;  %v42_v0 = vld [vmem:[#allocation5] sm:$0xff]  ;;  %v43_v1 = vld [vmem:[#allocation5 + $0x8] sm:$0xff]  ;;  %v2909_v46 = vmov 0.0  }
  0x27   :  { %v44_v2 = vld [vmem:[#allocation5 + $0x10] sm:$0xff]  ;;  %v54_v3 = vand.u32 4294901760, %v42_v0  ;;  %v57_v4 = vand.u32 4294901760, %v43_v1  ;;  %v45_v5 = vld [vmem:[#allocation5 + $0x18] sm:$0xff]  ;;  %2598 = vmatprep.subr.mxu1 %v2909_v46  ;;  %vm2910_vm1 = vmmov 0   ;;  %s2911_s1 = smov 112  }
  0x28   :  { %v60_v6 = vand.u32 4294901760, %v44_v2  ;;  %v40_v7 = vld [vmem:[#allocation2] sm:$0xff]  ;;  %v41_v8 = vld [vmem:[#allocation2 + $0x8] sm:$0xff]  ;;  %v63_v9 = vand.u32 4294901760, %v45_v5  ;;  %2600 = vmatprep.mubr.msk.f32.mxu1 %vm2910_vm1, %v2909_v46  ;;  %vm586_vm2 = vcmask 130048   ;;  %vm1501_vm4 = vcmask 64512  }
  0x29   :  { %v48_v10 = vsel %vm46_vm0, %v40_v7, 0  ;;  %v51_v11 = vsel %vm46_vm0, %v41_v8, 0  ;;  %v2959_v12 = vpack.c.bf16 %v57_v4, %v54_v3  ;;  %v144_v15 = vsub.f32 %v42_v0, %v54_v3  ;;  %s2912_s6 = smov 96   ;;  %s2913_s7 = smov [#allocation7]  }
  0x2a   :  { %v2961_v13 = vand.u32 4294901760, %v48_v10  ;;  %v2963_v14 = vand.u32 4294901760, %v51_v11  ;;  %v2965_v16 = vpack.c.bf16 %v63_v9, %v60_v6  ;;  %v151_v17 = vsub.f32 %v43_v1, %v57_v4  ;;  %s2435_s8 = sshll.u32 %s2913_s7, 4  ;;  %s2436_s8 = int_to_ptr.vmem [resolvable:$true] %s2435_s8 }
  0x2b   :  { %v158_v18 = vsub.f32 %v44_v2, %v60_v6  ;;  %v165_v19 = vsub.f32 %v45_v5, %v63_v9  ;;  %2719 = vmatprep.subr.bf16.mxu0 %v2959_v12  ;;  %v145_v22 = vand.u32 4294901760, %v144_v15  ;;  %s2877_s9 = scalar_lea.vmem %s2436_s8, 256  ;;  %p2882_p3 = scmp.lt.s32.totalorder %s2436_s8, %s2436_s8 }
  0x2c   :  { %v123_v20 = vsub.f32 %v48_v10, %v2961_v13  ;;  %v133_v21 = vsub.f32 %v51_v11, %v2963_v14  ;;  %2721 = vmatpush3.bf16.msra.mxu0 %v2959_v12  ;;  %v152_v23 = vand.u32 4294901760, %v151_v17  ;;  %v2734_v42 = vpack.c.bf16 %v151_v17, %v144_v15  ;;  %p2878_p2 = scmp.ne.s32.totalorder %s2436_s8, %s2877_s9  ;;  %p2883_p4 = scmp.lt.s32.totalorder %s2877_s9, %s2877_s9 }
  0x2d   :  { %v159_v24 = vand.u32 4294901760, %v158_v18  ;;  %v166_v25 = vand.u32 4294901760, %v165_v19  ;;  %2723 = vmatprep.subr.bf16.mxu0 %v2965_v16  ;;  %v146_v28 = vsub.f32 %v144_v15, %v145_v22  ;;  %v2738_v43 = vpack.c.bf16 %v165_v19, %v158_v18 }
  0x2e   :  { %v124_v26 = vand.u32 4294901760, %v123_v20  ;;  %v134_v27 = vand.u32 4294901760, %v133_v21  ;;  %v153_v29 = vsub.f32 %v151_v17, %v152_v23  ;;  %v2750_v44 = vpack.c.bf16 %v152_v23, %v145_v22  ;;  %p2884_p5 = por %p2883_p4, %p2882_p3 }
  0x2f   :  { %v160_v30 = vsub.f32 %v158_v18, %v159_v24  ;;  %v167_v31 = vsub.f32 %v165_v19, %v166_v25  ;;  %v147_v34 = vand.u32 4294901760, %v146_v28  ;;  %v2754_v45 = vpack.c.bf16 %v166_v25, %v159_v24 }
  0x30   :  { %v125_v32 = vsub.f32 %v123_v20, %v124_v26  ;;  %v135_v33 = vsub.f32 %v133_v21, %v134_v27  ;;  %2725 = vmatpush3.bf16.msra.mxu0 %v2965_v16  ;;  %v154_v35 = vand.u32 4294901760, %v153_v29  ;;  %p2885_p6 = pnand %p2884_p5, %p2878_p2 }
  0x31   :  { %v161_v36 = vand.u32 4294901760, %v160_v30  ;;  %v168_v37 = vand.u32 4294901760, %v167_v31 }
  0x32   :  { %v126_v38 = vand.u32 4294901760, %v125_v32  ;;  %v136_v39 = vand.u32 4294901760, %v135_v33  ;;  %v2726_v40 = vpack.c.bf16 %v154_v35, %v147_v34 }
  0x33   :  { %v2730_v41 = vpack.c.bf16 %v168_v37, %v161_v36 }
  0x34   :  { %2540 = vmatprep.mubr.f32.mxu0 %v126_v38  ;;  %2727 = vmatprep.subr.bf16.mxu0 %v2726_v40 }
  0x35   :  { %2541 = vmatmul.mubr.f32.vlgmr.msra.gmra.mrb[0].mxu0 %v136_v39 }
  0x36   :  { %2729 = vmatpush3.bf16.msra.mxu0 %v2726_v40  ;;  %2551 = vmatprep.mubr.f32.mxu0 %v2961_v13 }
  0x37   :  { %2731 = vmatprep.subr.bf16.mxu0 %v2730_v41 }
  0x3a   :  { %2733 = vmatpush3.bf16.msra.mxu0 %v2730_v41 }
  0x3b   :  { %2735 = vmatprep.subr.bf16.mxu0 %v2734_v42 }
  0x3d   :  { %2552 = vmatmul.mubr.f32.vlgmr.msra.gmra.mrb[0].mxu0 %v2963_v14 }
  0x3e   :  { %2737 = vmatpush3.bf16.msra.mxu0 %v2734_v42  ;;  %2562 = vmatprep.mubr.f32.mxu0 %v123_v20 }
  0x3f   :  { %2739 = vmatprep.subr.bf16.mxu0 %v2738_v43 }
  0x42   :  { %2741 = vmatpush3.bf16.msra.mxu0 %v2738_v43 }
  0x43   :  { %2743 = vmatprep.subr.bf16.mxu0 %v2959_v12 }
  0x45   :  { %2563 = vmatmul.mubr.f32.vlgmr.msra.gmra.mrb[0].mxu0 %v133_v21 }
  0x46   :  { %2745 = vmatpush3.bf16.msra.mxu0 %v2959_v12  ;;  %2573 = vmatprep.mubr.f32.mxu0 %v124_v26 }
  0x47   :  { %2747 = vmatprep.subr.bf16.mxu0 %v2965_v16 }
  0x4a   :  { %2749 = vmatpush3.bf16.msra.mxu0 %v2965_v16 }
  0x4b   :  { %2751 = vmatprep.subr.bf16.mxu0 %v2750_v44 }
  0x4d   :  { %2574 = vmatmul.mubr.f32.vlgmr.msra.gmra.mrb[0].mxu0 %v134_v27 }
  0x4e   :  { %2753 = vmatpush3.bf16.msra.mxu0 %v2750_v44  ;;  %2584 = vmatprep.mubr.f32.mxu0 %v2961_v13 }
  0x4f   :  { %2755 = vmatprep.subr.bf16.mxu0 %v2754_v45 }
  0x52   :  { %2757 = vmatpush3.bf16.msra.mxu0 %v2754_v45 }
  0x53   :  { %2759 = vmatprep.subr.bf16.mxu0 %v2959_v12 }
  0x55   :  { %2585 = vmatmul.mubr.f32.vlgmr.msra.gmra.mrb[0].mxu0 %v2963_v14 }
  0x56   :  { %2761 = vmatpush3.bf16.msra.mxu0 %v2959_v12  ;;  %2595 = vmatprep.mubr.f32.mxu0 %v2961_v13  ;;  %v1492_v13 = vlaneseq }
  0x57   :  { %2763 = vmatprep.subr.bf16.mxu0 %v2965_v16 }
  0x58   :  { %v1495_v15 = vand.u32 127, %v1492_v13 }
  0x5a   :  { %2765 = vmatpush3.bf16.msra.mxu0 %v2965_v16 }
  0x5b   :  { %2658 = vmatprep.subr.mxu0 %v2909_v46 }
  0x5d   :  { %2596 = vmatmul.mubr.f32.vlgmr.msra.gmra.mrb[0].mxu0 %v2963_v14  ;;  %v1493_v14 = vshrl.u32 %v1492_v13, 7 }
  0x5e   :  { %2660 = vmatprep.mubr.msk.f32.mxu0 %vm2910_vm1, %v2909_v46 }
  0x5f   :  { %vm1496_vm3 = vcmp.ge.s32.totalorder %v1493_v14, %v1495_v15 }
 0x130   :  { %v2993_v47 = vpop.f32.mrb[0].mxu0 }
 0x131   :  { %v2995_v48 = vpop.f32.mrb[1].mxu0  ;;  %v582_v63 = vmul.f32 4.0, %v2993_v47 }
 0x132   :  { %584 = vrot.lane.b32.xlu0 %v2995_v48, %s2911_s1  ;;  %v581_v49 = vmul.f32 4.0, %v2995_v48 }
 0x133   :  { %v1042_v1 = vsel %vm586_vm2, %v582_v63, 0 }
 0x134   :  { %v588_v50 = vsel %vm586_vm2, %v581_v49, 0  ;;  %v1112_v3 = vand.u32 4294901760, %v1042_v1 }
 0x135   :  { %v658_v51 = vand.u32 4294901760, %v588_v50 }
 0x136   :  { %1039 = vrot.lane.b32.xlu0 %v2993_v47, %s2911_s1  ;;  %v1113_v5 = vsub.f32 %v1042_v1, %v1112_v3 }
 0x137   :  { %v659_v52 = vsub.f32 %v588_v50, %v658_v51 }
 0x138   :  { %v1114_v7 = vand.u32 4294901760, %v1113_v5 }
 0x139   :  { %v660_v53 = vand.u32 4294901760, %v659_v52 }
 0x13a   :  { %v1115_v9 = vsub.f32 %v1113_v5, %v1114_v7 }
 0x13b   :  { %v661_v56 = vsub.f32 %v659_v52, %v660_v53 }
 0x13c   :  { %v1116_v11 = vand.u32 4294901760, %v1115_v9 }
 0x13d   :  { %v662_v59 = vand.u32 4294901760, %v661_v56 }
 0x1a4   :  { %v585_v54 = vpop.permute.xlu0 %584 }
 0x1a5   :  { %v590_v55 = vsel %vm586_vm2, %v585_v54, 0 }
 0x1a6   :  { %v593_v57 = vand.u32 4294901760, %v590_v55 }
 0x1a8   :  { %v670_v58 = vsub.f32 %v590_v55, %v593_v57  ;;  %2599 = vmatpush3.xpose.msra.mxu1 %v593_v57  ;;  %v1040_v0 = vpop.permute.xlu0 %1039 }
 0x1a9   :  { %2603 = vmatprep.subr.mxu1 %v2909_v46  ;;  %v1044_v2 = vsel %vm586_vm2, %v1040_v0, 0 }
 0x1aa   :  { %v671_v60 = vand.u32 4294901760, %v670_v58  ;;  %v1047_v4 = vand.u32 4294901760, %v1044_v2 }
 0x1ab   :  { %2601 = vmatmul.mubr.f32.vlgmr.msra.gmra.mrb[0].mxu1 %v662_v59 }
 0x1ac   :  { %v672_v61 = vsub.f32 %v670_v58, %v671_v60  ;;  %2605 = vmatprep.mubr.msk.f32.mxu1 %vm2910_vm1, %v2909_v46  ;;  %v1124_v6 = vsub.f32 %v1044_v2, %v1047_v4 }
 0x1ae   :  { %v673_v62 = vand.u32 4294901760, %v672_v61  ;;  %v1125_v8 = vand.u32 4294901760, %v1124_v6 }
 0x1b0   :  { %2604 = vmatpush3.xpose.msra.mxu1 %v673_v62  ;;  %v1126_v10 = vsub.f32 %v1124_v6, %v1125_v8 }
 0x1b1   :  { %2608 = vmatprep.subr.mxu1 %v2909_v46 }
 0x1b2   :  { %v1127_v12 = vand.u32 4294901760, %v1126_v10 }
 0x1b3   :  { %2606 = vmatmul.mubr.f32.vlgmr.msra.gmra.mrb[0].mxu1 %v658_v51 }
 0x1b4   :  { %2609 = vmatpush3.xpose.msra.mxu1 %v670_v58  ;;  %2610 = vmatprep.mubr.msk.f32.mxu1 %vm2910_vm1, %v2909_v46 }
 0x1b5   :  { %2613 = vmatprep.subr.mxu1 %v2909_v46 }
 0x1bb   :  { %2611 = vmatmul.mubr.f32.vlgmr.msra.gmra.mrb[0].mxu1 %v659_v52 }
 0x1bc   :  { %2614 = vmatpush3.xpose.msra.mxu1 %v593_v57  ;;  %2615 = vmatprep.mubr.msk.f32.mxu1 %vm2910_vm1, %v2909_v46 }
 0x1bd   :  { %2618 = vmatprep.subr.mxu1 %v2909_v46 }
 0x1c3   :  { %2616 = vmatmul.mubr.f32.vlgmr.msra.gmra.mrb[0].mxu1 %v660_v53 }
 0x1c4   :  { %2619 = vmatpush3.xpose.msra.mxu1 %v671_v60  ;;  %2620 = vmatprep.mubr.msk.f32.mxu1 %vm2910_vm1, %v2909_v46 }
 0x1c5   :  { %2623 = vmatprep.subr.mxu1 %v2909_v46 }
 0x1cb   :  { %2621 = vmatmul.mubr.f32.vlgmr.msra.gmra.mrb[0].mxu1 %v658_v51 }
 0x1cc   :  { %2624 = vmatpush3.xpose.msra.mxu1 %v593_v57  ;;  %2625 = vmatprep.mubr.msk.f32.mxu1 %vm2910_vm1, %v2909_v46 }
 0x1cd   :  { %2628 = vmatprep.subr.mxu1 %v2909_v46 }
 0x1d3   :  { %2626 = vmatmul.mubr.f32.vlgmr.msra.gmra.mrb[0].mxu1 %v658_v51 }
 0x1d4   :  { %2629 = vmatpush3.xpose.msra.mxu1 %v1047_v4  ;;  %2630 = vmatprep.mubr.msk.f32.mxu1 %vm2910_vm1, %v2909_v46 }
 0x1d5   :  { %2633 = vmatprep.subr.mxu1 %v2909_v46 }
 0x1d7   :  { %2631 = vmatmul.mubr.f32.vlgmr.msra.gmra.mrb[2].mxu1 %v1116_v11 }
 0x1d8   :  { %2634 = vmatpush3.xpose.msra.mxu1 %v1127_v12  ;;  %2635 = vmatprep.mubr.msk.f32.mxu1 %vm2910_vm1, %v2909_v46 }
 0x1d9   :  { %2638 = vmatprep.subr.mxu1 %v2909_v46 }
 0x1df   :  { %2636 = vmatmul.mubr.f32.vlgmr.msra.gmra.mrb[2].mxu1 %v1112_v3 }
 0x1e0   :  { %2639 = vmatpush3.xpose.msra.mxu1 %v1124_v6  ;;  %2640 = vmatprep.mubr.msk.f32.mxu1 %vm2910_vm1, %v2909_v46 }
 0x1e1   :  { %2643 = vmatprep.subr.mxu1 %v2909_v46 }
 0x1e7   :  { %2641 = vmatmul.mubr.f32.vlgmr.msra.gmra.mrb[2].mxu1 %v1113_v5 }
 0x1e8   :  { %2644 = vmatpush3.xpose.msra.mxu1 %v1047_v4  ;;  %2645 = vmatprep.mubr.msk.f32.mxu1 %vm2910_vm1, %v2909_v46 }
 0x1e9   :  { %2648 = vmatprep.subr.mxu1 %v2909_v46 }
 0x1ef   :  { %2646 = vmatmul.mubr.f32.vlgmr.msra.gmra.mrb[2].mxu1 %v1114_v7 }
 0x1f0   :  { %2649 = vmatpush3.xpose.msra.mxu1 %v1125_v8  ;;  %2650 = vmatprep.mubr.msk.f32.mxu1 %vm2910_vm1, %v2909_v46 }
 0x1f1   :  { %2653 = vmatprep.subr.mxu1 %v2909_v46 }
 0x1f7   :  { %2651 = vmatmul.mubr.f32.vlgmr.msra.gmra.mrb[2].mxu1 %v1112_v3 }
 0x1f8   :  { %2654 = vmatpush3.xpose.msra.mxu1 %v1047_v4  ;;  %2655 = vmatprep.mubr.msk.f32.mxu1 %vm2910_vm1, %v2909_v46 }
 0x1f9   :  { %2688 = vmatprep.subr.mxu1 %v2909_v46 }
 0x1ff   :  { %2656 = vmatmul.mubr.f32.vlgmr.msra.gmra.mrb[2].mxu1 %v1112_v3 }
 0x200   :  { %2690 = vmatprep.mubr.msk.f32.mxu1 %vm2910_vm1, %v2909_v46 }
 0x2a6   :  { %v1034_v16 = vpop.f32.mrb[0].mxu1 }
 0x2a7   :  { %v1499_v17 = vsel %vm1496_vm3, %v1034_v16, -inf  ;;  %v2627_v18 = vpop.f32.mrb[1].mxu1 }
 0x2a8   :  { %v1502_v19 = vsel %vm1501_vm4, %v1499_v17, -inf }
 0x2a9   :  { %1503 = vmax.xlane.f32.xlu1 %v1502_v19 }
 0x2d2   :  { %v1488_v20 = vpop.f32.mrb[2].mxu1 }
 0x2d3   :  { %v1500_v21 = vsel %vm1496_vm3, %v1488_v20, -inf  ;;  %v2657_v22 = vpop.f32.mrb[3].mxu1 }
 0x2d4   :  { %v1505_v23 = vsel %vm1501_vm4, %v1500_v21, -inf }
 0x2d5   :  { %1506 = vmax.xlane.f32.xlu1 %v1505_v23 }
 0x2e6   :  { %1524 = vrot.lane.b32.xlu1 %v2995_v48, %s2912_s6 }
 0x336   :  { %v1504_v24 = vpop.xlane.xlu1 %1503 }
 0x337   :  { %v1508_v25 = vsub.f32 %v1499_v17, %v1504_v24 }
 0x339   :  { %v1510_v26 = vmul.f32 1.442695, %v1508_v25 }
 0x33b   :  { %2825 = vpow2.f32 %v1510_v26 }
 0x345   :  { %v2826_v27 = vpop.eup %2825 }
 0x346   :  { %v1514_v28 = vsel %vm1501_vm4, %v2826_v27, 0.0 }
 0x347   :  { %1515 = vadd.xlane.f32.xlu0 %v1514_v28 }
 0x362   :  { %v1507_v29 = vpop.xlane.xlu1 %1506 }
 0x363   :  { %v1509_v30 = vsub.f32 %v1500_v21, %v1507_v29 }
 0x365   :  { %v1512_v31 = vmul.f32 1.442695, %v1509_v30 }
 0x366   :  { %v1525_v32 = vpop.permute.xlu1 %1524 }
 0x367   :  { %2827 = vpow2.f32 %v1512_v31  ;;  %v1531_v33 = vand.u32 4294901760, %v1525_v32 }
 0x369   :  { %2659 = vmatpush3.msra.mxu0 %v1531_v33  ;;  %v1608_v38 = vsub.f32 %v1525_v32, %v1531_v33 }
 0x36a   :  { %2663 = vmatprep.subr.mxu0 %v2909_v46 }
 0x36b   :  { %v1609_v42 = vand.u32 4294901760, %v1608_v38 }
 0x36d   :  { %v1610_v45 = vsub.f32 %v1608_v38, %v1609_v42 }
 0x36f   :  { %v1611_v50 = vand.u32 4294901760, %v1610_v45 }
 0x371   :  { %v2828_v34 = vpop.eup %2827 }
 0x372   :  { %v1517_v35 = vsel %vm1501_vm4, %v2828_v34, 0.0 }
 0x373   :  { %1518 = vadd.xlane.f32.xlu1 %v1517_v35 }
 0x384   :  { %1976 = vrot.lane.b32.xlu1 %v2993_v47, %s2912_s6 }
 0x3d4   :  { %v1516_v36 = vpop.xlane.xlu0 %1515 }
 0x3d5   :  { %2829 = vrcp.f32 %v1516_v36 }
 0x3df   :  { %v2830_v37 = vpop.eup %2829 }
 0x3e0   :  { %v1521_v39 = vmul.f32 %v2830_v37, %v2826_v27 }
 0x3e2   :  { %v1528_v40 = vsel %vm1501_vm4, %v1521_v39, 0 }
 0x3e3   :  { %v1596_v41 = vand.u32 4294901760, %v1528_v40 }
 0x3e5   :  { %v1597_v43 = vsub.f32 %v1528_v40, %v1596_v41 }
 0x3e7   :  { %v1598_v44 = vand.u32 4294901760, %v1597_v43 }
 0x3e9   :  { %v1599_v48 = vsub.f32 %v1597_v43, %v1598_v44 }
 0x3eb   :  { %v1600_v49 = vand.u32 4294901760, %v1599_v48 }
 0x3ed   :  { %2661 = vmatmul.mubr.f32.vlgmr.msra.gmra.mrb[2].mxu0 %v1600_v49 }
 0x3ee   :  { %2664 = vmatpush3.msra.mxu0 %v1611_v50  ;;  %2665 = vmatprep.mubr.msk.f32.mxu0 %vm2910_vm1, %v2909_v46 }
 0x3ef   :  { %2668 = vmatprep.subr.mxu0 %v2909_v46 }
 0x3f5   :  { %2666 = vmatmul.mubr.f32.vlgmr.msra.gmra.mrb[2].mxu0 %v1596_v41 }
 0x3f6   :  { %2669 = vmatpush3.msra.mxu0 %v1608_v38  ;;  %2670 = vmatprep.mubr.msk.f32.mxu0 %vm2910_vm1, %v2909_v46 }
 0x3f7   :  { %2673 = vmatprep.subr.mxu0 %v2909_v46 }
 0x3fd   :  { %2671 = vmatmul.mubr.f32.vlgmr.msra.gmra.mrb[2].mxu0 %v1597_v43 }
 0x3fe   :  { %2674 = vmatpush3.msra.mxu0 %v1531_v33  ;;  %2675 = vmatprep.mubr.msk.f32.mxu0 %vm2910_vm1, %v2909_v46 }
 0x3ff   :  { %2678 = vmatprep.subr.mxu0 %v2909_v46 }
 0x400   :  { %v1519_v47 = vpop.xlane.xlu1 %1518 }
 0x401   :  { %2831 = vrcp.f32 %v1519_v47 }
 0x404   :  { %v1977_v51 = vpop.permute.xlu1 %1976 }
 0x405   :  { %v1983_v52 = vand.u32 4294901760, %v1977_v51  ;;  %2676 = vmatmul.mubr.f32.vlgmr.msra.gmra.mrb[2].mxu0 %v1598_v44 }
 0x406   :  { %2679 = vmatpush3.msra.mxu0 %v1609_v42  ;;  %2680 = vmatprep.mubr.msk.f32.mxu0 %vm2910_vm1, %v2909_v46 }
 0x407   :  { %2689 = vmatpush3.msra.mxu1 %v1983_v52  ;;  %2683 = vmatprep.subr.mxu0 %v2909_v46  ;;  %v2060_v55 = vsub.f32 %v1977_v51, %v1983_v52 }
 0x408   :  { %2693 = vmatprep.subr.mxu1 %v2909_v46 }
 0x409   :  { %v2061_v58 = vand.u32 4294901760, %v2060_v55 }
 0x40b   :  { %v2832_v53 = vpop.eup %2831  ;;  %v2062_v61 = vsub.f32 %v2060_v55, %v2061_v58 }
 0x40c   :  { %v1523_v54 = vmul.f32 %v2832_v53, %v2828_v34 }
 0x40d   :  { %2681 = vmatmul.mubr.f32.vlgmr.msra.gmra.mrb[2].mxu0 %v1596_v41  ;;  %v2063_v0 = vand.u32 4294901760, %v2062_v61 }
 0x40e   :  { %2684 = vmatpush3.msra.mxu0 %v1531_v33  ;;  %2685 = vmatprep.mubr.msk.f32.mxu0 %vm2910_vm1, %v2909_v46  ;;  %v1980_v56 = vsel %vm1501_vm4, %v1523_v54, 0 }
 0x40f   :  { %v2048_v57 = vand.u32 4294901760, %v1980_v56 }
 0x411   :  { %v2049_v59 = vsub.f32 %v1980_v56, %v2048_v57 }
 0x413   :  { %v2050_v60 = vand.u32 4294901760, %v2049_v59 }
 0x415   :  { %2686 = vmatmul.mubr.f32.vlgmr.msra.gmra.mrb[2].mxu0 %v1596_v41  ;;  %v2051_v62 = vsub.f32 %v2049_v59, %v2050_v60 }
 0x417   :  { %v2052_v63 = vand.u32 4294901760, %v2051_v62 }
 0x419   :  { %2691 = vmatmul.mubr.f32.vlgmr.msra.gmra.mrb[4].mxu1 %v2052_v63 }
 0x41a   :  { %2694 = vmatpush3.msra.mxu1 %v2063_v0  ;;  %2695 = vmatprep.mubr.msk.f32.mxu1 %vm2910_vm1, %v2909_v46 }
 0x41b   :  { %2698 = vmatprep.subr.mxu1 %v2909_v46 }
 0x421   :  { %2696 = vmatmul.mubr.f32.vlgmr.msra.gmra.mrb[4].mxu1 %v2048_v57 }
 0x422   :  { %2699 = vmatpush3.msra.mxu1 %v2060_v55  ;;  %2700 = vmatprep.mubr.msk.f32.mxu1 %vm2910_vm1, %v2909_v46 }
 0x423   :  { %2703 = vmatprep.subr.mxu1 %v2909_v46 }
 0x429   :  { %2701 = vmatmul.mubr.f32.vlgmr.msra.gmra.mrb[4].mxu1 %v2049_v59 }
 0x42a   :  { %2704 = vmatpush3.msra.mxu1 %v1983_v52  ;;  %2705 = vmatprep.mubr.msk.f32.mxu1 %vm2910_vm1, %v2909_v46 }
 0x42b   :  { %2708 = vmatprep.subr.mxu1 %v2909_v46 }
 0x431   :  { %2706 = vmatmul.mubr.f32.vlgmr.msra.gmra.mrb[4].mxu1 %v2050_v60 }
 0x432   :  { %2709 = vmatpush3.msra.mxu1 %v2061_v58  ;;  %2710 = vmatprep.mubr.msk.f32.mxu1 %vm2910_vm1, %v2909_v46 }
 0x433   :  { %2713 = vmatprep.subr.mxu1 %v2909_v46 }
 0x439   :  { %2711 = vmatmul.mubr.f32.vlgmr.msra.gmra.mrb[4].mxu1 %v2048_v57 }
 0x43a   :  { %2714 = vmatpush3.msra.mxu1 %v1983_v52  ;;  %2715 = vmatprep.mubr.msk.f32.mxu1 %vm2910_vm1, %v2909_v46 }
 0x441   :  { %2716 = vmatmul.mubr.f32.vlgmr.msra.gmra.mrb[4].mxu1 %v2048_v57 }
 0x4e8   :  { %v1972_v1 = vpop.f32.mrb[2].mxu0 }
 0x4e9   :  { %2428 = vst.msk [vmem:[#allocation7] sm:$0xff] %vm586_vm2, %v1972_v1  ;;  %v2687_v2 = vpop.f32.mrb[3].mxu0 }
 0x514   :  { %v2424_v3 = vpop.f32.mrb[4].mxu1 }
 0x515   :  { %2429 = vst.msk [vmem:[#allocation7 + $0x8] sm:$0xff] %vm586_vm2, %v2424_v3  ;;  %v2717_v4 = vpop.f32.mrb[5].mxu1 }
 0x516   :  { %2888 = shalt.err (!%p2885_p6)
}
 0x517   :  { %s2889_s12 = scalar_lea.hbm %s3098_s2, 256 }
 0x518   :  { %p2890_p7 = scmp.ne.s32.totalorder %s3098_s2, %s2889_s12  ;;  %p2893_p8 = scmp.lt.u32.totalorder %s2889_s12, %s3098_s2 }
 0x51a   :  { %p2895_p9 = pnand %p2893_p8, %p2890_p7 }
 0x51c   :  { %2898 = shalt.err (!%p2895_p9)
}
 0x51d   :  { %2441 = dma.vmem_to_hbm [thread:$0]  %s2436_s8, 256, %s3098_s2, [#allocation4], %s2906_s19, %s2906_s19, %s2907_s20  }
 0x51e   :  { %2903 = dma.done.wait [#allocation4], 256  }
 0x51f   :  { %2904 = vsyncadd [#allocation4], 4294967040 }
 0x520   :  { %2445 = vsyncpa [#allocation3], 1 }
 0x521   :  { %2446 = vsyncpa [#allocation6], 1 }
 0x522   :  { %2447 = vsyncpa [#allocation4], 1 }

</bundles_post_ra>
